<compile_context>
chip_gen: v7x
topology: tpu7x:2x2x1
jax: 0.10.0
libtpu: 0.0.40
codegen_flags: <defaults>
</compile_context>

<pallas_src>
import functools
import math

import jax
import jax.numpy as jnp
from jax.experimental import pallas as pl
from jax.experimental.pallas import tpu as pltpu


# ---------------------------------------------------------------------------
# Kernels
# ---------------------------------------------------------------------------
def _sum_kernel_weighted(w_ref, *refs, n):
    # w_ref : SMEM (n,) float32 weights, w_ref[0] == 1.0
    # refs  : n VMEM input tiles (tm, L) followed by the output tile (tm, L)
    x_refs = refs[:n]
    o_ref = refs[n]
    acc = x_refs[0][...].astype(jnp.float32)
    for i in range(1, n):                       # n is static -> fully unrolled
        acc = acc + x_refs[i][...].astype(jnp.float32) * w_ref[i]
    o_ref[...] = acc.astype(o_ref.dtype)


def _sum_kernel_plain(*refs, n):
    x_refs = refs[:n]
    o_ref = refs[n]
    acc = x_refs[0][...].astype(jnp.float32)
    for i in range(1, n):
        acc = acc + x_refs[i][...].astype(jnp.float32)
    o_ref[...] = acc.astype(o_ref.dtype)


# ---------------------------------------------------------------------------
# Tiling selection
# ---------------------------------------------------------------------------
_LANE_CHOICES = (2048, 1024, 512, 256, 128)


def _choose_tiling(total, itemsize, target_block_bytes):
    # Lane width: widest choice that divides total (no padding); else pad at 512.
    lanes = None
    for c in _LANE_CHOICES:
        if total % c == 0:
            lanes = c
            break
    if lanes is None:
        lanes = 512
    rows = pl.cdiv(total, lanes)

    # Sublane count per block: target ~target_block_bytes per input block.
    tm = max(1, target_block_bytes // (lanes * itemsize))
    if tm >= rows:
        tm = rows                         # single block: full-dim block is legal
    else:
        tm = max(8, (tm // 8) * 8)        # multiple of 8 sublanes

    grid = pl.cdiv(rows, tm)
    return lanes, tm, grid


# ---------------------------------------------------------------------------
# Wrapper
# ---------------------------------------------------------------------------
def sum_module(xs, weight=False, params=None):
    """yolov5 Sum forward.

    xs:      list of n arrays, identical shape & dtype (e.g. NCHW feature maps).
    weight:  if True, y = x[0] + sum_i x[i+1] * sigmoid(p_i) * 2.
    params:  optional (n-1,) raw parameters p; default is the nn.Parameter init
             -arange(1, n) / 2.
    """
    n = len(xs)
    shape = xs[0].shape
    dtype = xs[0].dtype
    total = math.prod(shape)
    itemsize = jnp.dtype(dtype).itemsize

    # Pick block bytes so 2*(n+1) double-buffered blocks stay well inside the
    # scoped-VMEM budget (v7x scoped default is smallest), but keep blocks big
    # (>= ~1 MiB) so per-grid-step overhead is amortized.
    budget = 28 << 20
    target_block_bytes = max(1 << 20, min(4 << 20, budget // (2 * (n + 1))))

    lanes, tm, grid = _choose_tiling(total, itemsize, target_block_bytes)
    padded_rows = grid * tm
    padded_total = padded_rows * lanes

    def to_slab(a):
        flat = a.reshape(-1)
        if padded_total != total:
            flat = jnp.pad(flat, (0, padded_total - total))
        return flat.reshape(padded_rows, lanes)

    inputs = [to_slab(x) for x in xs]
    x_spec = pl.BlockSpec((tm, lanes), lambda i: (i, 0))
    in_specs = [x_spec] * n

    if weight and n > 1:
        if params is None:
            p = -jnp.arange(1.0, float(n), dtype=jnp.float32) / 2.0
        else:
            p = jnp.asarray(params, dtype=jnp.float32)
        w_tail = jax.nn.sigmoid(p) * 2.0
        w = jnp.concatenate([jnp.ones((1,), jnp.float32), w_tail])   # f32 in SMEM
        inputs = [w] + inputs
        in_specs = [pl.BlockSpec(memory_space=pltpu.SMEM)] + in_specs
        kernel = functools.partial(_sum_kernel_weighted, n=n)
    else:
        kernel = functools.partial(_sum_kernel_plain, n=n)

    # Double-buffered (n inputs + 1 output) VMEM footprint -> explicit limit.
    block_bytes = tm * lanes * itemsize
    footprint = 2 * (n + 1) * block_bytes
    vmem_limit = int(min(max(footprint + (4 << 20), 16 << 20), 48 << 20))

    out2d = pl.pallas_call(
        kernel,
        out_shape=jax.ShapeDtypeStruct((padded_rows, lanes), dtype),
        grid_spec=pltpu.PrefetchScalarGridSpec(
            num_scalar_prefetch=0,
            grid=(grid,),
            in_specs=in_specs,
            out_specs=pl.BlockSpec((tm, lanes), lambda i: (i, 0)),
        ),
        compiler_params=pltpu.CompilerParams(
            dimension_semantics=("parallel",),
            vmem_limit_bytes=vmem_limit,
        ),
    )(*inputs)

    out_flat = out2d.reshape(-1)
    if padded_total != total:
        out_flat = out_flat[:total]
    return out_flat.reshape(shape)


# ---------------------------------------------------------------------------
# Reference (plain JAX) and self-test
# ---------------------------------------------------------------------------
def _reference(xs, weight=False):
    n = len(xs)
    y = xs[0]
    if weight and n > 1:
        p = -jnp.arange(1.0, float(n), dtype=jnp.float32) / 2.0
        w = jax.nn.sigmoid(p) * 2.0
        for i in range(n - 1):
            y = y + xs[i + 1] * w[i]
    else:
        for i in range(n - 1):
            y = y + xs[i + 1]
    return y


if __name__ == "__main__":
    ok = True

    # Case 1: n = 3, NCHW (2, 4, 16, 16), f32, weighted and unweighted.
    n = 3
    B, C, H, W = 2, 4, 16, 16
    keys = jax.random.split(jax.random.PRNGKey(0), n)
    xs = [jax.random.normal(k, (B, C, H, W), dtype=jnp.float32) for k in keys]
    for use_weight in (False, True):
        out = sum_module(xs, weight=use_weight)
        jax.block_until_ready(out)
        ref = _reference(xs, weight=use_weight)
        if out.shape != ref.shape or not jnp.allclose(out, ref, atol=1e-5, rtol=1e-5):
            ok = False

    # Case 2: bf16 inputs (f32 accumulation path), n = 2.
    keys_bf = jax.random.split(jax.random.PRNGKey(2), 2)
    xs_bf = [jax.random.normal(k, (2, 4, 16, 16), dtype=jnp.bfloat16) for k in keys_bf]
    out = sum_module(xs_bf, weight=True)
    jax.block_until_ready(out)
    ref = _reference(xs_bf, weight=True)
    if out.shape != ref.shape or not jnp.allclose(
        out.astype(jnp.float32), ref.astype(jnp.float32), atol=2e-2, rtol=2e-2
    ):
        ok = False

    # Case 3: shape whose element count is not a multiple of 128 (padded tail).
    keys2 = jax.random.split(jax.random.PRNGKey(1), 2)
    xs_odd = [jax.random.normal(k, (2, 3, 7, 5), dtype=jnp.float32) for k in keys2]
    out = sum_module(xs_odd, weight=True)
    jax.block_until_ready(out)
    ref = _reference(xs_odd, weight=True)
    if out.shape != ref.shape or not jnp.allclose(out, ref, atol=1e-5, rtol=1e-5):
        ok = False

    if ok:
        print("KERNEL_OK")
</pallas_src>

<mosaic_0001>
module attributes {stable_mosaic.version = 11 : i64} {
  func.func @_sum_kernel_plain(%arg0: i32, %arg1: memref<1x2048xf32, #tpu.memory_space<vmem>>, %arg2: memref<1x2048xf32, #tpu.memory_space<vmem>>, %arg3: memref<1x2048xf32, #tpu.memory_space<vmem>>, %arg4: memref<1x2048xf32, #tpu.memory_space<vmem>>) attributes {dimension_semantics = [#tpu.dimension_semantics<parallel>], iteration_bounds = array<i64: 1>, scalar_prefetch = 0 : i64, scratch_operands = 0 : i64, tpu.core_type = #tpu.core_type<tc>, window_params = [{transform_indices = @transform_0, window_bounds = array<i64: 1, 2048>}, {transform_indices = @transform_1, window_bounds = array<i64: 1, 2048>}, {transform_indices = @transform_2, window_bounds = array<i64: 1, 2048>}, {transform_indices = @transform_3, window_bounds = array<i64: 1, 2048>}]} {
    %c0 = arith.constant 0 : index
    %c0_0 = arith.constant 0 : index
    %0 = vector.load %arg1[%c0, %c0_0] : memref<1x2048xf32, #tpu.memory_space<vmem>>, vector<1x2048xf32>
    %c0_1 = arith.constant 0 : index
    %c0_2 = arith.constant 0 : index
    %1 = vector.load %arg2[%c0_1, %c0_2] : memref<1x2048xf32, #tpu.memory_space<vmem>>, vector<1x2048xf32>
    %2 = arith.addf %0, %1 : vector<1x2048xf32>
    %c0_3 = arith.constant 0 : index
    %c0_4 = arith.constant 0 : index
    %3 = vector.load %arg3[%c0_3, %c0_4] : memref<1x2048xf32, #tpu.memory_space<vmem>>, vector<1x2048xf32>
    %4 = arith.addf %2, %3 : vector<1x2048xf32>
    %c0_5 = arith.constant 0 : index
    %c0_6 = arith.constant 0 : index
    %5 = vector.load %arg4[%c0_5, %c0_6] : memref<1x2048xf32, #tpu.memory_space<vmem>>, vector<1x2048xf32>
    tpu.vector_store %arg4[%c0_5, %c0_6], %4 {strides = array<i32>} : memref<1x2048xf32, #tpu.memory_space<vmem>>, vector<1x2048xf32>,
    return
  }
  func.func @transform_0(%arg0: i32) -> (i32, i32) {
    %c0_i32 = arith.constant 0 : i32
    %c0_i32_0 = arith.constant 0 : i32
    return %arg0, %c0_i32 : i32, i32
  }
  func.func @transform_1(%arg0: i32) -> (i32, i32) {
    %c0_i32 = arith.constant 0 : i32
    %c0_i32_0 = arith.constant 0 : i32
    return %arg0, %c0_i32 : i32, i32
  }
  func.func @transform_2(%arg0: i32) -> (i32, i32) {
    %c0_i32 = arith.constant 0 : i32
    %c0_i32_0 = arith.constant 0 : i32
    return %arg0, %c0_i32 : i32, i32
  }
  func.func @transform_3(%arg0: i32) -> (i32, i32) {
    %c0_i32 = arith.constant 0 : i32
    %c0_i32_0 = arith.constant 0 : i32
    return %arg0, %c0_i32 : i32, i32
  }
}

</mosaic_0001>

<bundles_post_ra>
// kernel: tpu_custom_call.1
= control target key start
LH: loop header
LB: loop body
LE: loop exit
PB: predicated region body
PF: predicated region fallthrough
CT: control target
= control target key end

     0   :  { %8 = vsyncpa [#allocation3], 0  ;;  %s248_s0 = inlined_call_operand.hbm [shape: f32[1,2048], index: 0, kind: input, shape index: {}]   ;;  %s249_s1 = inlined_call_operand.hbm [shape: f32[1,2048], index: 1, kind: input, shape index: {}]   ;;  %s250_s2 = inlined_call_operand.hbm [shape: f32[1,2048], index: 2, kind: input, shape index: {}]   ;;  %s251_s3 = inlined_call_operand.hbm [shape: f32[1,2048], index: 3, kind: output, shape index: {}]  }
   0x1   :  { %9 = vsyncpa [#allocation6], 0 }
   0x2   :  { %10 = vsyncpa [#allocation4], 0  ;;  %s176_s12 = smov [#allocation5]   ;;  %s177_s14 = smov [#allocation2]  }
   0x3   :  { %s27_s13 = sshll.u32 %s176_s12, 4  ;;  %s17_s15 = sshll.u32 %s177_s14, 4  ;;  %s28_s13 = int_to_ptr.vmem [resolvable:$true] %s27_s13  ;;  %s18_s15 = int_to_ptr.vmem [resolvable:$true] %s17_s15 }
   0x4   :  { %s82_s18 = scalar_lea.hbm %s249_s1, 256 }
   0x5   :  { %p83_p0 = scmp.ne.s32.totalorder %s249_s1, %s82_s18  ;;  %p86_p1 = scmp.lt.u32.totalorder %s82_s18, %s249_s1 }
   0x7   :  { %p88_p2 = pnand %p86_p1, %p83_p0 }
   0x9   :  { %91 = shalt.err (!%p88_p2)
}
   0xa   :  { %s92_s23 = scalar_lea.vmem %s28_s13, 256  ;;  %p97_p4 = scmp.lt.s32.totalorder %s28_s13, %s28_s13 }
   0xb   :  { %p93_p3 = scmp.ne.s32.totalorder %s28_s13, %s92_s23  ;;  %p98_p5 = scmp.lt.s32.totalorder %s92_s23, %s92_s23 }
   0xd   :  { %p99_p6 = por %p98_p5, %p97_p4 }
   0xf   :  { %p100_p7 = pnand %p99_p6, %p93_p3 }
  0x11   :  { %103 = shalt.err (!%p100_p7)
}
  0x12   :  { %30 = dma.hbm_to_vmem [thread:$0]  %s249_s1, 256, %s28_s13, [#allocation6]  }
  0x13   :  { %s104_s28 = scalar_lea.hbm %s248_s0, 256 }
  0x14   :  { %p105_p8 = scmp.ne.s32.totalorder %s248_s0, %s104_s28  ;;  %p108_p9 = scmp.lt.u32.totalorder %s104_s28, %s248_s0 }
  0x16   :  { %p110_p10 = pnand %p108_p9, %p105_p8 }
  0x18   :  { %113 = shalt.err (!%p110_p10)
}
  0x19   :  { %s114_s6 = scalar_lea.vmem %s18_s15, 256  ;;  %p119_p12 = scmp.lt.s32.totalorder %s18_s15, %s18_s15 }
  0x1a   :  { %p115_p11 = scmp.ne.s32.totalorder %s18_s15, %s114_s6  ;;  %p120_p13 = scmp.lt.s32.totalorder %s114_s6, %s114_s6 }
  0x1c   :  { %p121_p0 = por %p120_p13, %p119_p12 }
  0x1e   :  { %p122_p1 = pnand %p121_p0, %p115_p11 }
  0x20   :  { %125 = shalt.err (!%p122_p1)
}
  0x21   :  { %20 = dma.hbm_to_vmem [thread:$0]  %s248_s0, 256, %s18_s15, [#allocation3]  }
  0x22   :  { %s178_s8 = smov [#allocation7]   ;;  %s126_s12 = scalar_lea.hbm %s250_s2, 256 }
  0x23   :  { %s37_s9 = sshll.u32 %s178_s8, 4  ;;  %p127_p2 = scmp.ne.s32.totalorder %s250_s2, %s126_s12  ;;  %s38_s9 = int_to_ptr.vmem [resolvable:$true] %s37_s9 }
  0x24   :  { %p130_p3 = scmp.lt.u32.totalorder %s126_s12, %s250_s2 }
  0x26   :  { %p132_p4 = pnand %p130_p3, %p127_p2 }
  0x28   :  { %135 = shalt.err (!%p132_p4)
}
  0x29   :  { %s136_s18 = scalar_lea.vmem %s38_s9, 256  ;;  %p141_p6 = scmp.lt.s32.totalorder %s38_s9, %s38_s9 }
  0x2a   :  { %p137_p5 = scmp.ne.s32.totalorder %s38_s9, %s136_s18  ;;  %p142_p7 = scmp.lt.s32.totalorder %s136_s18, %s136_s18 }
  0x2c   :  { %p143_p8 = por %p142_p7, %p141_p6 }
  0x2e   :  { %p144_p9 = pnand %p143_p8, %p137_p5 }
  0x30   :  { %147 = shalt.err (!%p144_p9)
}
  0x31   :  { %40 = dma.hbm_to_vmem [thread:$0]  %s250_s2, 256, %s38_s9, [#allocation6]  }
  0x32   :  { %170 = dma.done.wait [#allocation3], 256  }
  0x33   :  { %171 = vsyncadd [#allocation3], 4294967040 }
  0x34   :  { %172 = dma.done.wait [#allocation6], 512  }
  0x35   :  { %173 = vsyncadd [#allocation6], 4294966784  ;;  %v50_v0 = vld [vmem:[#allocation2] sm:$0xff]  ;;  %v52_v1 = vld [vmem:[#allocation5] sm:$0xff]  ;;  %s179_s19 = smov [#allocation8]  }
  0x36   :  { %v56_v2 = vld [vmem:[#allocation7] sm:$0xff]  ;;  %v54_v3 = vadd.f32 %v52_v1, %v50_v0  ;;  %v51_v4 = vld [vmem:[#allocation2 + $0x8] sm:$0xff]  ;;  %v53_v5 = vld [vmem:[#allocation5 + $0x8] sm:$0xff]  ;;  %s68_s20 = sshll.u32 %s179_s19, 4  ;;  %s69_s20 = int_to_ptr.vmem [resolvable:$true] %s68_s20 }
  0x37   :  { %v57_v6 = vld [vmem:[#allocation7 + $0x8] sm:$0xff]  ;;  %v55_v7 = vadd.f32 %v53_v5, %v51_v4  ;;  %s148_s2 = scalar_lea.vmem %s69_s20, 256  ;;  %p153_p11 = scmp.lt.s32.totalorder %s69_s20, %s69_s20 }
  0x38   :  { %v58_v8 = vadd.f32 %v56_v2, %v54_v3  ;;  %p149_p10 = scmp.ne.s32.totalorder %s69_s20, %s148_s2  ;;  %p154_p12 = scmp.lt.s32.totalorder %s148_s2, %s148_s2 }
  0x39   :  { %v59_v9 = vadd.f32 %v57_v6, %v55_v7 }
  0x3a   :  { %60 = vst [vmem:[#allocation8] sm:$0xff] %v58_v8  ;;  %p155_p13 = por %p154_p12, %p153_p11 }
  0x3b   :  { %61 = vst [vmem:[#allocation8 + $0x8] sm:$0xff] %v59_v9 }
  0x3c   :  { %p156_p0 = pnand %p155_p13, %p149_p10 }
  0x3e   :  { %159 = shalt.err (!%p156_p0)
}
  0x3f   :  { %s160_s23 = scalar_lea.hbm %s251_s3, 256 }
  0x40   :  { %p161_p1 = scmp.ne.s32.totalorder %s251_s3, %s160_s23  ;;  %p164_p2 = scmp.lt.u32.totalorder %s160_s23, %s251_s3 }
  0x42   :  { %p166_p3 = pnand %p164_p2, %p161_p1 }
  0x44   :  { %169 = shalt.err (!%p166_p3)
}
  0x45   :  { %71 = dma.vmem_to_hbm [thread:$0]  %s69_s20, 256, %s251_s3, [#allocation4]  }
  0x46   :  { %174 = dma.done.wait [#allocation4], 256  }
  0x47   :  { %175 = vsyncadd [#allocation4], 4294967040 }
  0x48   :  { %75 = vsyncpa [#allocation3], 1 }
  0x49   :  { %76 = vsyncpa [#allocation6], 1 }
  0x4a   :  { %77 = vsyncpa [#allocation4], 1 }

</bundles_post_ra>
